<compile_context>
chip_gen: v7x
topology: tpu7x:2x2x1
jax: 0.10.0
libtpu: 0.0.40
codegen_flags: <defaults>
</compile_context>

<pallas_src>
import numpy as np
import jax
import jax.numpy as jnp
from jax import lax
from jax.experimental import pallas as pl
from jax.experimental.pallas import tpu as pltpu


# ----------------------------- kernel side -----------------------------------

def _newton_reciprocal(x):
    """EUP approximate reciprocal refined by one Newton-Raphson step."""
    r = pl.reciprocal(x, approx=True)
    return r * (jnp.float32(2.0) - x * r)


def _min_uninorm(a, b, n):
    """Vectorised UninormAggregator.min_uninorm on (P, blk) slabs.

    a, b: (P, blk) f32; n: (P, 1) per-row neutral.
    Lukasiewicz t-norm/t-conorm, 'min' off-diagonal, algebraically simplified
    (y00 = max(0, a+b-n), y11 = min(1, a+b-n)).  Overwrite order: cross default,
    then both_low, then both_high -- reproduces torch's mask order including
    the a==n==b tie falling into the t-conorm branch.
    """
    s = a + b - n
    both_low = jnp.logical_and(a <= n, b <= n)
    both_high = jnp.logical_and(a >= n, b >= n)
    y = jnp.minimum(a, b)                                   # cross / off-diagonal
    y = jnp.where(both_low, jnp.maximum(jnp.float32(0.0), s), y)
    y = jnp.where(both_high, jnp.minimum(jnp.float32(1.0), s), y)
    return y


def _score_hierarchy_kernel(x_ref, neutral_ref, out_ref):
    D, P, _ = x_ref.shape                 # (D, P, blk): lane-major batch block
    n = neutral_ref[...]                  # (P, 1) f32, row 0 is a dummy

    # D clean full-tile (P, blk) slabs, one per raw score column.
    cols = [x_ref[j] for j in range(D)]

    # --- pos/neg head: softmax([mean(x[0,:]), mean(sum(x[1:,:], dim=0))]) ----
    colsum = cols[0]
    for j in range(1, D):
        colsum = colsum + cols[j]                          # (P, blk) sum over D
    inv_d = jnp.float32(1.0 / D)
    m0 = colsum[0:1, :] * inv_d                            # (1, blk)
    total = jnp.sum(colsum, axis=0, keepdims=True)         # (1, blk)
    m1 = (total - colsum[0:1, :]) * inv_d                  # (1, blk)
    mx = jnp.maximum(m0, m1)
    e0 = jnp.exp(m0 - mx)
    e1 = jnp.exp(m1 - mx)
    inv01 = _newton_reciprocal(e0 + e1)
    pn0 = e0 * inv01                                       # (1, blk)
    pn1 = e1 * inv01                                       # (1, blk)

    # --- uninorm tree over the D scores, torch's adjacent-pair recursion -----
    # (Row 0 rides along with a dummy neutral and is discarded below.)
    while len(cols) > 1:
        cols = [_min_uninorm(cols[2 * i], cols[2 * i + 1], n)
                for i in range(len(cols) // 2)]
    agg = cols[0]                                          # (P, blk)

    # --- softmax of agg restricted to rows 1..P-1 -----------------------------
    rows = lax.broadcasted_iota(jnp.int32, (P, 1), 0)      # (P, 1)
    agg_m = jnp.where(rows >= 1, agg, jnp.float32(-1e30))
    amax = jnp.max(agg_m, axis=0, keepdims=True)           # (1, blk)
    eg = jnp.exp(agg_m - amax)                             # row 0 -> 0
    inv_l = _newton_reciprocal(jnp.sum(eg, axis=0, keepdims=True))
    sm = eg * inv_l                                        # (P, blk)

    # --- data-dependent branch of forward(), as vector selects ----------------
    cond = pn0 >= jnp.float32(0.5)                         # (1, blk)
    row0_val = jnp.where(cond, pn0, jnp.float32(0.0))      # (1, blk)
    rest_val = jnp.where(cond, pn1 * sm, agg)              # (P, blk)
    out_ref[...] = jnp.where(rows == 0, row0_val, rest_val)


# ----------------------------- host-side wrapper ------------------------------

def _round_up(v, m):
    return (v + m - 1) // m * m


def _choose_block(b, block_b):
    """Pick a lane block width (multiple of 128) and the padded batch size."""
    bp = _round_up(max(b, 1), 128)
    if bp <= 128:
        return 128, 128
    cap = max(_round_up(block_b, 128), 128)
    steps = max(2, -(-bp // cap))       # >= 2 grid steps when there is enough
    if steps % 2:                       # work, and even so v7x's 2 TCs split it
        steps += 1
    blk = _round_up(-(-bp // steps), 128)
    return blk, blk * steps


def score_hierarchy_net_lanes(x, neutral, block_b=4096):
    """Primary (relayout-free) entry point.

    x: (D, P, B) f32 -- D raw scores, P score-hierarchy rows, B independent
    instances batched on the fast lane axis.  neutral: (P-1,) f32 per-row
    uninorm neutral (the module's learned parameter).
    Returns (P, B) f32: one ScoreHierarchyNet.forward() per lane.
    """
    D, P, B = x.shape
    # TODO(synk): non-power-of-2 D builds an irregular tree in torch's
    # recursion; only power-of-2 D is supported by the pairwise reduction.
    assert D >= 1 and (D & (D - 1)) == 0, "D must be a power of 2"

    blk, bp = _choose_block(B, block_b)
    x = x.astype(jnp.float32)
    if bp != B:
        x = jnp.pad(x, ((0, 0), (0, 0), (0, bp - B)), constant_values=0.5)

    # pad neutral with a dummy row-0 entry so it aligns with the full row axis
    neutral_pad = jnp.concatenate(
        [jnp.full((1,), 0.5, jnp.float32),
         neutral.astype(jnp.float32).reshape(-1)]).reshape(P, 1)

    # VMEM budget: double-buffered in/out pipeline copies + in-kernel slabs.
    # Sized to stay well inside v7x's smaller (64 MiB phys / 32 MiB scoped)
    # VMEM while still letting v5e/v6e run fat lane blocks.
    in_block = 4 * D * P * blk
    out_block = 4 * P * blk
    vmem_bytes = int(min(max(2 * (in_block + out_block) + 4 * in_block + (2 << 20),
                             16 << 20), 32 << 20))

    out = pl.pallas_call(
        _score_hierarchy_kernel,
        out_shape=jax.ShapeDtypeStruct((P, bp), jnp.float32),
        grid_spec=pltpu.PrefetchScalarGridSpec(
            num_scalar_prefetch=0,
            grid=(bp // blk,),
            in_specs=[pl.BlockSpec((D, P, blk), lambda b: (0, 0, b)),
                      # constant block index -> fetched once, stays resident
                      pl.BlockSpec((P, 1), lambda b: (0, 0))],
            out_specs=pl.BlockSpec((P, blk), lambda b: (0, b)),
        ),
        compiler_params=pltpu.CompilerParams(
            dimension_semantics=("parallel",),
            vmem_limit_bytes=vmem_bytes),
    )(x, neutral_pad)

    return out[:, :B]


def score_hierarchy_net_batched(x, neutral, block_b=4096):
    """Convenience wrapper: x (B, P, D) -> (B, P).

    Costs one XLA transpose copy of x (no gather); prefer
    score_hierarchy_net_lanes if the producer can emit (D, P, B) directly.
    """
    out = score_hierarchy_net_lanes(jnp.transpose(x, (2, 1, 0)), neutral, block_b)
    return out.T


def score_hierarchy_net(x, neutral):
    """Single-instance interface matching torch: x (P, D) -> (P,)."""
    return score_hierarchy_net_lanes(x.T[:, :, None], neutral)[:, 0]


# ----------------------------- numpy reference --------------------------------

def _ref_min_uninorm(x, n):
    a, b = x[:, 0], x[:, 1]
    y = np.zeros(x.shape[0], dtype=np.float32)
    m00 = (a <= n) & (b <= n)
    m11 = (a >= n) & (b >= n)
    mxx = ((a > n) & (b < n)) | ((a < n) & (b > n))
    with np.errstate(divide="ignore", invalid="ignore"):
        y00 = n * np.maximum(0.0, a / n + b / n - 1.0)
        y11 = n + (1.0 - n) * np.minimum(1.0, (a - n) / (1.0 - n) + (b - n) / (1.0 - n))
    y[m00] = y00[m00]
    y[m11] = y11[m11]
    y[mxx] = np.minimum(a, b)[mxx]
    return y


def _ref_uninorm(x, n):
    k = x.shape[1]
    if k == 1:
        return x[:, 0]
    if k == 2:
        return _ref_min_uninorm(x, n)
    half = k // 2
    stacked = np.stack([_ref_uninorm(x[:, :half], n),
                        _ref_uninorm(x[:, half:], n)], axis=1)
    return _ref_min_uninorm(stacked, n)


def _ref_forward(x, neutral):
    def softmax(v):
        e = np.exp(v - np.max(v))
        return e / e.sum()
    pos_neg = softmax(np.array([x[0].mean(), x[1:].sum(axis=0).mean()],
                               dtype=np.float32))
    agg = _ref_uninorm(x[1:], neutral)
    out = np.zeros(x.shape[0], dtype=np.float32)
    if pos_neg[0] >= 0.5:
        out[0] = pos_neg[0]
        out[1:] = pos_neg[1] * softmax(agg)
    else:
        out[1:] = agg
    return out


# ----------------------------- main -------------------------------------------

if __name__ == "__main__":
    P, D, B = 8, 8, 512            # 8 score slots, 8 raw scores, 512 instances
    init_neutral = 0.5

    key = jax.random.PRNGKey(0)
    # generate directly in the lane-major (D, P, B) layout -- no relayout pass
    x = jax.random.uniform(key, (D, P, B), dtype=jnp.float32)
    # damp the hierarchy rows of the first half of the batch so both sides of
    # the data-dependent pos_neg branch are exercised
    scale = jnp.where(jnp.arange(B) < B // 2, 0.05, 1.0).astype(jnp.float32)
    row_is_hier = (jnp.arange(P) >= 1)
    x = x * jnp.where(row_is_hier[None, :, None], scale[None, None, :], 1.0)

    # UninormAggregator.__init__: neutral = ones(num_params - 1) * init_neutral
    neutral = jnp.ones((P - 1,), jnp.float32) * init_neutral

    out = score_hierarchy_net_lanes(x, neutral)          # (P, B)
    out = jax.block_until_ready(out)

    xn = np.transpose(np.asarray(x, np.float32), (2, 1, 0))       # (B, P, D)
    nn_ = np.asarray(neutral, np.float32)
    ref = np.stack([_ref_forward(xn[b], nn_) for b in range(B)], axis=1)  # (P, B)
    np.testing.assert_allclose(np.asarray(out), ref, rtol=1e-5, atol=1e-5)
    print("KERNEL_OK")
</pallas_src>

<mosaic_0001>
module attributes {stable_mosaic.version = 11 : i64} {
  func.func @_score_hierarchy_kernel(%arg0: i32, %arg1: memref<8x8x256xf32, #tpu.memory_space<vmem>>, %arg2: memref<8x1xf32, #tpu.memory_space<vmem>>, %arg3: memref<8x256xf32, #tpu.memory_space<vmem>>) attributes {dimension_semantics = [#tpu.dimension_semantics<parallel>], iteration_bounds = array<i64: 2>, scalar_prefetch = 0 : i64, scratch_operands = 0 : i64, tpu.core_type = #tpu.core_type<tc>, window_params = [{transform_indices = @transform_0, window_bounds = array<i64: 8, 8, 256>}, {pipeline_mode = #tpu.pipeline_mode<synchronous>, transform_indices = @transform_1, window_bounds = array<i64: 8, 1>}, {transform_indices = @transform_2, window_bounds = array<i64: 8, 256>}]} {
    %c0 = arith.constant 0 : index
    %c0_0 = arith.constant 0 : index
    %0 = vector.load %arg2[%c0, %c0_0] : memref<8x1xf32, #tpu.memory_space<vmem>>, vector<8x1xf32>
    %c0_1 = arith.constant 0 : index
    %c0_2 = arith.constant 0 : index
    %c0_3 = arith.constant 0 : index
    %1 = vector.load %arg1[%c0_1, %c0_2, %c0_3] : memref<8x8x256xf32, #tpu.memory_space<vmem>>, vector<1x8x256xf32>
    %2 = vector.shape_cast %1 : vector<1x8x256xf32> to vector<8x256xf32>
    %c1 = arith.constant 1 : index
    %c0_4 = arith.constant 0 : index
    %c0_5 = arith.constant 0 : index
    %3 = vector.load %arg1[%c1, %c0_4, %c0_5] : memref<8x8x256xf32, #tpu.memory_space<vmem>>, vector<1x8x256xf32>
    %4 = vector.shape_cast %3 : vector<1x8x256xf32> to vector<8x256xf32>
    %c2 = arith.constant 2 : index
    %c0_6 = arith.constant 0 : index
    %c0_7 = arith.constant 0 : index
    %5 = vector.load %arg1[%c2, %c0_6, %c0_7] : memref<8x8x256xf32, #tpu.memory_space<vmem>>, vector<1x8x256xf32>
    %6 = vector.shape_cast %5 : vector<1x8x256xf32> to vector<8x256xf32>
    %c3 = arith.constant 3 : index
    %c0_8 = arith.constant 0 : index
    %c0_9 = arith.constant 0 : index
    %7 = vector.load %arg1[%c3, %c0_8, %c0_9] : memref<8x8x256xf32, #tpu.memory_space<vmem>>, vector<1x8x256xf32>
    %8 = vector.shape_cast %7 : vector<1x8x256xf32> to vector<8x256xf32>
    %c4 = arith.constant 4 : index
    %c0_10 = arith.constant 0 : index
    %c0_11 = arith.constant 0 : index
    %9 = vector.load %arg1[%c4, %c0_10, %c0_11] : memref<8x8x256xf32, #tpu.memory_space<vmem>>, vector<1x8x256xf32>
    %10 = vector.shape_cast %9 : vector<1x8x256xf32> to vector<8x256xf32>
    %c5 = arith.constant 5 : index
    %c0_12 = arith.constant 0 : index
    %c0_13 = arith.constant 0 : index
    %11 = vector.load %arg1[%c5, %c0_12, %c0_13] : memref<8x8x256xf32, #tpu.memory_space<vmem>>, vector<1x8x256xf32>
    %12 = vector.shape_cast %11 : vector<1x8x256xf32> to vector<8x256xf32>
    %c6 = arith.constant 6 : index
    %c0_14 = arith.constant 0 : index
    %c0_15 = arith.constant 0 : index
    %13 = vector.load %arg1[%c6, %c0_14, %c0_15] : memref<8x8x256xf32, #tpu.memory_space<vmem>>, vector<1x8x256xf32>
    %14 = vector.shape_cast %13 : vector<1x8x256xf32> to vector<8x256xf32>
    %c7 = arith.constant 7 : index
    %c0_16 = arith.constant 0 : index
    %c0_17 = arith.constant 0 : index
    %15 = vector.load %arg1[%c7, %c0_16, %c0_17] : memref<8x8x256xf32, #tpu.memory_space<vmem>>, vector<1x8x256xf32>
    %16 = vector.shape_cast %15 : vector<1x8x256xf32> to vector<8x256xf32>
    %17 = arith.addf %2, %4 : vector<8x256xf32>
    %18 = arith.addf %17, %6 : vector<8x256xf32>
    %19 = arith.addf %18, %8 : vector<8x256xf32>
    %20 = arith.addf %19, %10 : vector<8x256xf32>
    %21 = arith.addf %20, %12 : vector<8x256xf32>
    %22 = arith.addf %21, %14 : vector<8x256xf32>
    %23 = arith.addf %22, %16 : vector<8x256xf32>
    %24 = vector.extract_strided_slice %23 {offsets = [0, 0], sizes = [1, 256], strides = [1, 1]} : vector<8x256xf32> to vector<1x256xf32>
    %cst = arith.constant 1.250000e-01 : f32
    %25 = vector.broadcast %cst : f32 to vector<1x256xf32>
    %26 = arith.mulf %24, %25 : vector<1x256xf32>
    %cst_18 = arith.constant dense<0.000000e+00> : vector<256xf32>
    %27 = vector.multi_reduction <add>, %23, %cst_18 [0] : vector<8x256xf32> to vector<256xf32>
    %28 = vector.shape_cast %27 : vector<256xf32> to vector<1x256xf32>
    %29 = vector.extract_strided_slice %23 {offsets = [0, 0], sizes = [1, 256], strides = [1, 1]} : vector<8x256xf32> to vector<1x256xf32>
    %30 = arith.subf %28, %29 : vector<1x256xf32>
    %cst_19 = arith.constant 1.250000e-01 : f32
    %31 = vector.broadcast %cst_19 : f32 to vector<1x256xf32>
    %32 = arith.mulf %30, %31 : vector<1x256xf32>
    %33 = arith.maximumf %26, %32 : vector<1x256xf32>
    %34 = arith.subf %26, %33 : vector<1x256xf32>
    %35 = math.exp %34 : vector<1x256xf32>
    %36 = arith.subf %32, %33 : vector<1x256xf32>
    %37 = math.exp %36 : vector<1x256xf32>
    %38 = arith.addf %35, %37 : vector<1x256xf32>
    %39 = tpu.reciprocal %38 {approx = true} : vector<1x256xf32> -> vector<1x256xf32>
    %40 = arith.mulf %38, %39 : vector<1x256xf32>
    %cst_20 = arith.constant 2.000000e+00 : f32
    %41 = vector.broadcast %cst_20 : f32 to vector<1x256xf32>
    %42 = arith.subf %41, %40 : vector<1x256xf32>
    %43 = arith.mulf %39, %42 : vector<1x256xf32>
    %44 = arith.mulf %35, %43 : vector<1x256xf32>
    %45 = arith.mulf %37, %43 : vector<1x256xf32>
    %46 = arith.addf %2, %4 : vector<8x256xf32>
    %47 = vector.broadcast %0 : vector<8x1xf32> to vector<8x256xf32>
    %48 = arith.subf %46, %47 : vector<8x256xf32>
    %49 = vector.broadcast %0 : vector<8x1xf32> to vector<8x256xf32>
    %50 = arith.cmpf ole, %2, %49 : vector<8x256xf32>
    %51 = vector.broadcast %0 : vector<8x1xf32> to vector<8x256xf32>
    %52 = arith.cmpf ole, %4, %51 : vector<8x256xf32>
    %53 = arith.andi %50, %52 : vector<8x256xi1>
    %54 = vector.broadcast %0 : vector<8x1xf32> to vector<8x256xf32>
    %55 = arith.cmpf oge, %2, %54 : vector<8x256xf32>
    %56 = vector.broadcast %0 : vector<8x1xf32> to vector<8x256xf32>
    %57 = arith.cmpf oge, %4, %56 : vector<8x256xf32>
    %58 = arith.andi %55, %57 : vector<8x256xi1>
    %59 = arith.minimumf %2, %4 : vector<8x256xf32>
    %cst_21 = arith.constant 0.000000e+00 : f32
    %60 = vector.broadcast %cst_21 : f32 to vector<8x256xf32>
    %61 = arith.maximumf %60, %48 : vector<8x256xf32>
    %62 = arith.select %53, %61, %59 : vector<8x256xi1>, vector<8x256xf32>
    %cst_22 = arith.constant 1.000000e+00 : f32
    %63 = vector.broadcast %cst_22 : f32 to vector<8x256xf32>
    %64 = arith.minimumf %63, %48 : vector<8x256xf32>
    %65 = arith.select %58, %64, %62 : vector<8x256xi1>, vector<8x256xf32>
    %66 = arith.addf %6, %8 : vector<8x256xf32>
    %67 = vector.broadcast %0 : vector<8x1xf32> to vector<8x256xf32>
    %68 = arith.subf %66, %67 : vector<8x256xf32>
    %69 = vector.broadcast %0 : vector<8x1xf32> to vector<8x256xf32>
    %70 = arith.cmpf ole, %6, %69 : vector<8x256xf32>
    %71 = vector.broadcast %0 : vector<8x1xf32> to vector<8x256xf32>
    %72 = arith.cmpf ole, %8, %71 : vector<8x256xf32>
    %73 = arith.andi %70, %72 : vector<8x256xi1>
    %74 = vector.broadcast %0 : vector<8x1xf32> to vector<8x256xf32>
    %75 = arith.cmpf oge, %6, %74 : vector<8x256xf32>
    %76 = vector.broadcast %0 : vector<8x1xf32> to vector<8x256xf32>
    %77 = arith.cmpf oge, %8, %76 : vector<8x256xf32>
    %78 = arith.andi %75, %77 : vector<8x256xi1>
    %79 = arith.minimumf %6, %8 : vector<8x256xf32>
    %cst_23 = arith.constant 0.000000e+00 : f32
    %80 = vector.broadcast %cst_23 : f32 to vector<8x256xf32>
    %81 = arith.maximumf %80, %68 : vector<8x256xf32>
    %82 = arith.select %73, %81, %79 : vector<8x256xi1>, vector<8x256xf32>
    %cst_24 = arith.constant 1.000000e+00 : f32
    %83 = vector.broadcast %cst_24 : f32 to vector<8x256xf32>
    %84 = arith.minimumf %83, %68 : vector<8x256xf32>
    %85 = arith.select %78, %84, %82 : vector<8x256xi1>, vector<8x256xf32>
    %86 = arith.addf %10, %12 : vector<8x256xf32>
    %87 = vector.broadcast %0 : vector<8x1xf32> to vector<8x256xf32>
    %88 = arith.subf %86, %87 : vector<8x256xf32>
    %89 = vector.broadcast %0 : vector<8x1xf32> to vector<8x256xf32>
    %90 = arith.cmpf ole, %10, %89 : vector<8x256xf32>
    %91 = vector.broadcast %0 : vector<8x1xf32> to vector<8x256xf32>
    %92 = arith.cmpf ole, %12, %91 : vector<8x256xf32>
    %93 = arith.andi %90, %92 : vector<8x256xi1>
    %94 = vector.broadcast %0 : vector<8x1xf32> to vector<8x256xf32>
    %95 = arith.cmpf oge, %10, %94 : vector<8x256xf32>
    %96 = vector.broadcast %0 : vector<8x1xf32> to vector<8x256xf32>
    %97 = arith.cmpf oge, %12, %96 : vector<8x256xf32>
    %98 = arith.andi %95, %97 : vector<8x256xi1>
    %99 = arith.minimumf %10, %12 : vector<8x256xf32>
    %cst_25 = arith.constant 0.000000e+00 : f32
    %100 = vector.broadcast %cst_25 : f32 to vector<8x256xf32>
    %101 = arith.maximumf %100, %88 : vector<8x256xf32>
    %102 = arith.select %93, %101, %99 : vector<8x256xi1>, vector<8x256xf32>
    %cst_26 = arith.constant 1.000000e+00 : f32
    %103 = vector.broadcast %cst_26 : f32 to vector<8x256xf32>
    %104 = arith.minimumf %103, %88 : vector<8x256xf32>
    %105 = arith.select %98, %104, %102 : vector<8x256xi1>, vector<8x256xf32>
    %106 = arith.addf %14, %16 : vector<8x256xf32>
    %107 = vector.broadcast %0 : vector<8x1xf32> to vector<8x256xf32>
    %108 = arith.subf %106, %107 : vector<8x256xf32>
    %109 = vector.broadcast %0 : vector<8x1xf32> to vector<8x256xf32>
    %110 = arith.cmpf ole, %14, %109 : vector<8x256xf32>
    %111 = vector.broadcast %0 : vector<8x1xf32> to vector<8x256xf32>
    %112 = arith.cmpf ole, %16, %111 : vector<8x256xf32>
    %113 = arith.andi %110, %112 : vector<8x256xi1>
    %114 = vector.broadcast %0 : vector<8x1xf32> to vector<8x256xf32>
    %115 = arith.cmpf oge, %14, %114 : vector<8x256xf32>
    %116 = vector.broadcast %0 : vector<8x1xf32> to vector<8x256xf32>
    %117 = arith.cmpf oge, %16, %116 : vector<8x256xf32>
    %118 = arith.andi %115, %117 : vector<8x256xi1>
    %119 = arith.minimumf %14, %16 : vector<8x256xf32>
    %cst_27 = arith.constant 0.000000e+00 : f32
    %120 = vector.broadcast %cst_27 : f32 to vector<8x256xf32>
    %121 = arith.maximumf %120, %108 : vector<8x256xf32>
    %122 = arith.select %113, %121, %119 : vector<8x256xi1>, vector<8x256xf32>
    %cst_28 = arith.constant 1.000000e+00 : f32
    %123 = vector.broadcast %cst_28 : f32 to vector<8x256xf32>
    %124 = arith.minimumf %123, %108 : vector<8x256xf32>
    %125 = arith.select %118, %124, %122 : vector<8x256xi1>, vector<8x256xf32>
    %126 = arith.addf %65, %85 : vector<8x256xf32>
    %127 = vector.broadcast %0 : vector<8x1xf32> to vector<8x256xf32>
    %128 = arith.subf %126, %127 : vector<8x256xf32>
    %129 = vector.broadcast %0 : vector<8x1xf32> to vector<8x256xf32>
    %130 = arith.cmpf ole, %65, %129 : vector<8x256xf32>
    %131 = vector.broadcast %0 : vector<8x1xf32> to vector<8x256xf32>
    %132 = arith.cmpf ole, %85, %131 : vector<8x256xf32>
    %133 = arith.andi %130, %132 : vector<8x256xi1>
    %134 = vector.broadcast %0 : vector<8x1xf32> to vector<8x256xf32>
    %135 = arith.cmpf oge, %65, %134 : vector<8x256xf32>
    %136 = vector.broadcast %0 : vector<8x1xf32> to vector<8x256xf32>
    %137 = arith.cmpf oge, %85, %136 : vector<8x256xf32>
    %138 = arith.andi %135, %137 : vector<8x256xi1>
    %139 = arith.minimumf %65, %85 : vector<8x256xf32>
    %cst_29 = arith.constant 0.000000e+00 : f32
    %140 = vector.broadcast %cst_29 : f32 to vector<8x256xf32>
    %141 = arith.maximumf %140, %128 : vector<8x256xf32>
    %142 = arith.select %133, %141, %139 : vector<8x256xi1>, vector<8x256xf32>
    %cst_30 = arith.constant 1.000000e+00 : f32
    %143 = vector.broadcast %cst_30 : f32 to vector<8x256xf32>
    %144 = arith.minimumf %143, %128 : vector<8x256xf32>
    %145 = arith.select %138, %144, %142 : vector<8x256xi1>, vector<8x256xf32>
    %146 = arith.addf %105, %125 : vector<8x256xf32>
    %147 = vector.broadcast %0 : vector<8x1xf32> to vector<8x256xf32>
    %148 = arith.subf %146, %147 : vector<8x256xf32>
    %149 = vector.broadcast %0 : vector<8x1xf32> to vector<8x256xf32>
    %150 = arith.cmpf ole, %105, %149 : vector<8x256xf32>
    %151 = vector.broadcast %0 : vector<8x1xf32> to vector<8x256xf32>
    %152 = arith.cmpf ole, %125, %151 : vector<8x256xf32>
    %153 = arith.andi %150, %152 : vector<8x256xi1>
    %154 = vector.broadcast %0 : vector<8x1xf32> to vector<8x256xf32>
    %155 = arith.cmpf oge, %105, %154 : vector<8x256xf32>
    %156 = vector.broadcast %0 : vector<8x1xf32> to vector<8x256xf32>
    %157 = arith.cmpf oge, %125, %156 : vector<8x256xf32>
    %158 = arith.andi %155, %157 : vector<8x256xi1>
    %159 = arith.minimumf %105, %125 : vector<8x256xf32>
    %cst_31 = arith.constant 0.000000e+00 : f32
    %160 = vector.broadcast %cst_31 : f32 to vector<8x256xf32>
    %161 = arith.maximumf %160, %148 : vector<8x256xf32>
    %162 = arith.select %153, %161, %159 : vector<8x256xi1>, vector<8x256xf32>
    %cst_32 = arith.constant 1.000000e+00 : f32
    %163 = vector.broadcast %cst_32 : f32 to vector<8x256xf32>
    %164 = arith.minimumf %163, %148 : vector<8x256xf32>
    %165 = arith.select %158, %164, %162 : vector<8x256xi1>, vector<8x256xf32>
    %166 = arith.addf %145, %165 : vector<8x256xf32>
    %167 = vector.broadcast %0 : vector<8x1xf32> to vector<8x256xf32>
    %168 = arith.subf %166, %167 : vector<8x256xf32>
    %169 = vector.broadcast %0 : vector<8x1xf32> to vector<8x256xf32>
    %170 = arith.cmpf ole, %145, %169 : vector<8x256xf32>
    %171 = vector.broadcast %0 : vector<8x1xf32> to vector<8x256xf32>
    %172 = arith.cmpf ole, %165, %171 : vector<8x256xf32>
    %173 = arith.andi %170, %172 : vector<8x256xi1>
    %174 = vector.broadcast %0 : vector<8x1xf32> to vector<8x256xf32>
    %175 = arith.cmpf oge, %145, %174 : vector<8x256xf32>
    %176 = vector.broadcast %0 : vector<8x1xf32> to vector<8x256xf32>
    %177 = arith.cmpf oge, %165, %176 : vector<8x256xf32>
    %178 = arith.andi %175, %177 : vector<8x256xi1>
    %179 = arith.minimumf %145, %165 : vector<8x256xf32>
    %cst_33 = arith.constant 0.000000e+00 : f32
    %180 = vector.broadcast %cst_33 : f32 to vector<8x256xf32>
    %181 = arith.maximumf %180, %168 : vector<8x256xf32>
    %182 = arith.select %173, %181, %179 : vector<8x256xi1>, vector<8x256xf32>
    %cst_34 = arith.constant 1.000000e+00 : f32
    %183 = vector.broadcast %cst_34 : f32 to vector<8x256xf32>
    %184 = arith.minimumf %183, %168 : vector<8x256xf32>
    %185 = arith.select %178, %184, %182 : vector<8x256xi1>, vector<8x256xf32>
    %186 = tpu.iota {dimensions = array<i32: 0>} : vector<8x1xi32>
    %c1_i32 = arith.constant 1 : i32
    %187 = vector.broadcast %c1_i32 : i32 to vector<8x1xi32>
    %188 = arith.cmpi sge, %186, %187 : vector<8x1xi32>
    %cst_35 = arith.constant -1.000000e+30 : f32
    %189 = vector.shape_cast %188 : vector<8x1xi1> to vector<8x1xi1>
    %190 = vector.broadcast %189 : vector<8x1xi1> to vector<8x256xi1>
    %191 = vector.broadcast %cst_35 : f32 to vector<8x256xf32>
    %192 = arith.select %190, %185, %191 : vector<8x256xi1>, vector<8x256xf32>
    %cst_36 = arith.constant dense<0xFF800000> : vector<256xf32>
    %193 = vector.multi_reduction <maximumf>, %192, %cst_36 [0] : vector<8x256xf32> to vector<256xf32>
    %194 = vector.shape_cast %193 : vector<256xf32> to vector<1x256xf32>
    %195 = vector.broadcast %194 : vector<1x256xf32> to vector<8x256xf32>
    %196 = arith.subf %192, %195 : vector<8x256xf32>
    %197 = math.exp %196 : vector<8x256xf32>
    %cst_37 = arith.constant dense<0.000000e+00> : vector<256xf32>
    %198 = vector.multi_reduction <add>, %197, %cst_37 [0] : vector<8x256xf32> to vector<256xf32>
    %199 = vector.shape_cast %198 : vector<256xf32> to vector<1x256xf32>
    %200 = tpu.reciprocal %199 {approx = true} : vector<1x256xf32> -> vector<1x256xf32>
    %201 = arith.mulf %199, %200 : vector<1x256xf32>
    %cst_38 = arith.constant 2.000000e+00 : f32
    %202 = vector.broadcast %cst_38 : f32 to vector<1x256xf32>
    %203 = arith.subf %202, %201 : vector<1x256xf32>
    %204 = arith.mulf %200, %203 : vector<1x256xf32>
    %205 = vector.broadcast %204 : vector<1x256xf32> to vector<8x256xf32>
    %206 = arith.mulf %197, %205 : vector<8x256xf32>
    %cst_39 = arith.constant 5.000000e-01 : f32
    %207 = vector.broadcast %cst_39 : f32 to vector<1x256xf32>
    %208 = arith.cmpf oge, %44, %207 : vector<1x256xf32>
    %cst_40 = arith.constant 0.000000e+00 : f32
    %209 = vector.broadcast %cst_40 : f32 to vector<1x256xf32>
    %210 = arith.select %208, %44, %209 : vector<1x256xi1>, vector<1x256xf32>
    %211 = vector.broadcast %45 : vector<1x256xf32> to vector<8x256xf32>
    %212 = arith.mulf %211, %206 : vector<8x256xf32>
    %213 = vector.shape_cast %208 : vector<1x256xi1> to vector<1x256xi1>
    %214 = vector.broadcast %213 : vector<1x256xi1> to vector<8x256xi1>
    %215 = arith.select %214, %212, %185 : vector<8x256xi1>, vector<8x256xf32>
    %c0_i32 = arith.constant 0 : i32
    %216 = vector.broadcast %c0_i32 : i32 to vector<8x1xi32>
    %217 = arith.cmpi eq, %186, %216 : vector<8x1xi32>
    %218 = vector.shape_cast %217 : vector<8x1xi1> to vector<8x1xi1>
    %219 = vector.broadcast %218 : vector<8x1xi1> to vector<8x256xi1>
    %220 = vector.shape_cast %210 : vector<1x256xf32> to vector<1x256xf32>
    %221 = vector.broadcast %220 : vector<1x256xf32> to vector<8x256xf32>
    %222 = arith.select %219, %221, %215 : vector<8x256xi1>, vector<8x256xf32>
    %c0_41 = arith.constant 0 : index
    %c0_42 = arith.constant 0 : index
    %223 = vector.load %arg3[%c0_41, %c0_42] : memref<8x256xf32, #tpu.memory_space<vmem>>, vector<8x256xf32>
    tpu.vector_store %arg3[%c0_41, %c0_42], %222 {strides = array<i32>} : memref<8x256xf32, #tpu.memory_space<vmem>>, vector<8x256xf32>,
    return
  }
  func.func @transform_0(%arg0: i32) -> (i32, i32, i32) {
    %c0_i32 = arith.constant 0 : i32
    %c0_i32_0 = arith.constant 0 : i32
    %c0_i32_1 = arith.constant 0 : i32
    return %c0_i32, %c0_i32_0, %arg0 : i32, i32, i32
  }
  func.func @transform_1(%arg0: i32) -> (i32, i32) {
    %c0_i32 = arith.constant 0 : i32
    %c0_i32_0 = arith.constant 0 : i32
    %c0_i32_1 = arith.constant 0 : i32
    return %c0_i32, %c0_i32_0 : i32, i32
  }
  func.func @transform_2(%arg0: i32) -> (i32, i32) {
    %c0_i32 = arith.constant 0 : i32
    %c0_i32_0 = arith.constant 0 : i32
    return %c0_i32, %arg0 : i32, i32
  }
}

</mosaic_0001>

<bundles_post_ra>
// kernel: tpu_custom_call.1
= control target key start
LH: loop header
LB: loop body
LE: loop exit
PB: predicated region body
PF: predicated region fallthrough
CT: control target
= control target key end

     0   :  { %7 = vsyncpa [#allocation3], 0  ;;  %s1348_s0 = inlined_call_operand.hbm [shape: f32[8,8,512], index: 0, kind: input, shape index: {}]   ;;  %s1349_s1 = inlined_call_operand.vmem [shape: f32[8,1], index: 1, kind: input, shape index: {}]   ;;  %s1350_s2 = inlined_call_operand.hbm [shape: f32[8,512], index: 2, kind: output, shape index: {}]  }
   0x1   :  { %9 = vsyncpa [#allocation3 + $0x1], 0 }
   0x2   :  { %10 = vsyncpa [#allocation4], 0 }
   0x3   :  { %12 = vsyncpa [#allocation4 + $0x1], 0  ;;  %s828_s9 = smov 0   ;;  %s830_s10 = smov 0  }
   0x4   :  { %s832_s11 = smov 0   ;;  %s834_s12 = smov 0  }
   0x5 LB: > { %s849_s13 = sadd.s32 4294967295, %s805_s12   ;;  %s608_s14 = sadd.s32 4294967294, %s805_s12   ;;  %s805_s12 = sphi %s834_s12, %s1384_s12   ;;  %s801_s11 = sphi %s832_s11, %s1383_s11   ;;  %s797_s10 = sphi %s830_s10, %s1382_s10   ;;  %s793_s9 = sphi %s828_s9, %s1381_s9  }
   0x6   : > { %s853_s15 = sadd.s32 1, %s805_s12   ;;  %s25_s16 = sadd.s32 1, %s801_s11 }
   0x7   : > { %s22_s17 = ssub.s32 %s805_s12, %s853_s15  ;;  %p32_p0 = scmp.ne.s32.totalorder %s801_s11, %s797_s10 }
   0x8   : > { %p23_p1 = scmp.eq.s32.totalorder %s22_s17, 0  ;;  %p33_p2 = scmp.eq.s32.totalorder %s805_s12, 0 }
   0x9   : > { %p38_p3 = scmp.ne.s32.totalorder %s797_s10, %s793_s9  ;;  %p39_p4 = scmp.eq.s32.totalorder %s849_s13, 0 }
   0xa   : > { %s865_s18 = scalar_select %p23_p1, %s801_s11, %s25_s16  }
   0xb   : > { %p867_p5 = por %p33_p2, %p32_p0  ;;  %p871_p6 = por %p39_p4, %p38_p3 }
   0xc   : > { %p83_p7 = scmp.eq.s32.totalorder %s849_s13, 1  ;;  %p89_p8 = scmp.eq.s32.totalorder %s608_s14, 1 }
   0xd   : > { %p650_p10 = scmp.lt.s32.totalorder %s805_s12, 2  ;;  %s112_s23 = sand.u32 1, %s801_s11  }
   0xe   : > { %p878_p11 = por %p83_p7, %p32_p0  ;;  %p882_p12 = por %p89_p8, %p38_p3 }
   0xf   : > { %s636_s24 = sshll.u32 %s805_s12, 8  ;;  %s611_s25 = sshll.u32 %s112_s23, 7 }
  0x10   : > { %s1354_s21 = scalar_select %p878_p11, 1, 0 }
  0x11   : > { %s1355_s22 = scalar_select %p882_p12, 1, 0 }
  0x12   : > { %s891_s28 = scalar_lea.hbm %s1348_s0, %s636_s24  ;;  %s116_s29 = scalar_lea.vmem [#allocation2], %s611_s25 }
  0x13   : > { %s123_s30 = sshll.u32 %s116_s29, 4  ;;  %p895_p13 = pnand %p650_p10, %p867_p5  ;;  %s899_s30 = int_to_ptr.vmem [resolvable:$true] %s123_s30 }
  0x14   : > { %s902_s4 = scalar_lea.sflag [#allocation3], %s112_s23  ;;  %s709_s5 = scalar_lea.hbm %s891_s28, 2048 }
  0x15   : > { %p710_p1 = scmp.ne.s32.totalorder %s891_s28, %s709_s5  ;;  %p711_p2 = pneg %p895_p13 }
  0x16   : > { %s714_s8 = scalar_lea.hbm %s1348_s0, 4096  ;;  %p715_p5 = scmp.lt.u32.totalorder %s891_s28, %s1348_s0 }
  0x17   : > { %p712_p3 = pnand %p711_p2, %p710_p1  ;;  %p716_p7 = scmp.lt.u32.totalorder %s714_s8, %s709_s5 }
  0x18   : > { %p718_p10 = scmp.lt.u32.totalorder %s709_s5, %s891_s28 }
  0x19   : > { %p713_p4 = pneg %p712_p3  ;;  %p717_p8 = por %p716_p7, %p715_p5 }
  0x1b   : > { %p719_p9 = por %p718_p10, %p717_p8 }
  0x1d   : > { %p720_p0 = pnand %p719_p9, %p713_p4 }
  0x1f   : > { %723 = shalt.err (!%p720_p0)
}
  0x20   : > { %s724_s17 = scalar_lea.vmem %s899_s30, 2048  ;;  %s807_s19 = smov [#allocation2]  }
  0x21   : > { %p725_p1 = scmp.ne.s32.totalorder %s899_s30, %s724_s17  ;;  %s729_s23 = sshll.u32 %s807_s19, 4  ;;  %s730_s23 = int_to_ptr.vmem [resolvable:$false] %s729_s23 }
  0x22   : > { %s731_s24 = scalar_lea.vmem %s730_s23, 4096  ;;  %p732_p11 = scmp.lt.s32.totalorder %s899_s30, %s730_s23 }
  0x23   : > { %p727_p3 = pnand %p725_p1, %p711_p2  ;;  %p733_p5 = scmp.lt.s32.totalorder %s731_s24, %s724_s17 }
  0x25   : > { %p728_p12 = pneg %p727_p3  ;;  %p734_p7 = por %p733_p5, %p732_p11 }
  0x27   : > { %p735_p8 = pnand %p734_p7, %p728_p12 }
  0x29   : > { %738 = shalt.err (!%p735_p8)
}
  0x2a   : > { %s808_s25 = smov 512   ;;  %s809_s26 = smov 256  }
  0x2b   : > { %s810_s27 = smov 16   ;;  %p131_p9 = scmp.lt.s32.totalorder %s805_s12, 3 }
  0x2c   : > { %645 = dma.hbm_to_vmem [thread:$0]  (!%p895_p13), %s891_s28, 2048, %s899_s30, %s902_s4, %s808_s25, %s809_s26, %s810_s27  }
  0x2d   : > { %p1357_p0 = scmp.ge.s32.totalorder %s805_s12, 1 }
  0x2f   : > { %p132_p2 = pnand %p1357_p0, %p131_p9 }
  0x30   : > { %s934_s29 = sand.u32 (!%p132_p2), 1, %s797_s10  }
  0x31   : > { %135 = sbr.rel (%p132_p2) target bundleno = 303 (0x12f), region = 28  ;;  %s615_s5 = sshll.u32 (!%p132_p2), %s934_s29, 7 }
  0x32   : > { %s138_s6 = scalar_lea.sflag (!%p132_p2), [#allocation3], %s934_s29  ;;  %s938_s7 = scalar_lea.vmem (!%p132_p2), [#allocation2], %s615_s5 }
  0x38   : > { %784 = dma.done.wait (%p871_p6), %s138_s6, 2048  }
  0x39   : > { %786 = vsyncadd (%p871_p6), %s138_s6, 4294965248  ;;  %v811_v0 = vmov 0   ;;  %v164_v1 = vld [vmem:[%s1349_s1] sm:$0xff]  ;;  %v952_v3 = vld [vmem:[%s938_s7 + $0x10] sm:$0xff]  ;;  %s616_s20 = sshll.u32 %s934_s29, 4  ;;  %s637_s3 = sshll.u32 %s849_s13, 8 }
  0x3a   : > { %688 = vset.pattern.permute.xlu0 %v811_v0  ;;  %v949_v2 = vld [vmem:[%s938_s7] sm:$0xff]  ;;  %v955_v4 = vld [vmem:[%s938_s7 + $0x8] sm:$0xff]  ;;  %v958_v5 = vld [vmem:[%s938_s7 + $0x18] sm:$0xff]  ;;  %s161_s4 = scalar_lea.vmem [#allocation5], %s616_s20  ;;  %s1304_s17 = scalar_lea.hbm %s1350_s2, %s637_s3 }
  0x3b   : > { %250 = vperm.xlu0 %688, %v164_v1   ;;  %v188_v6 = vadd.f32 %v952_v3, %v949_v2  ;;  %v963_v7 = vld [vmem:[%s938_s7 + $0x20] sm:$0xff]  ;;  %v189_v8 = vadd.f32 %v958_v5, %v955_v4  ;;  %v968_v9 = vld [vmem:[%s938_s7 + $0x28] sm:$0xff]  ;;  %v973_v12 = vld [vmem:[%s938_s7 + $0x30] sm:$0xff]  ;;  %v267_v50 = vmin.f32 %v949_v2, %v952_v3  ;;  %v268_v51 = vmin.f32 %v955_v4, %v958_v5  ;;  %s538_s8 = sshll.u32 %s161_s4, 4  ;;  %s524_s13 = scalar_lea.sflag [#allocation4], %s934_s29  ;;  %s1306_s8 = int_to_ptr.vmem [resolvable:$true] %s538_s8 }
  0x3c   : > { %v976_v13 = vld [vmem:[%s938_s7 + $0x38] sm:$0xff]  ;;  %v981_v16 = vld [vmem:[%s938_s7 + $0x40] sm:$0xff]  ;;  %v984_v17 = vld [vmem:[%s938_s7 + $0x48] sm:$0xff]  ;;  %v277_v46 = vadd.f32 %v973_v12, %v963_v7  ;;  %v293_v56 = vmin.f32 %v963_v7, %v973_v12  ;;  %s739_s19 = scalar_lea.vmem %s1306_s8, 256  ;;  %p1378_p11 = scmp.ne.s32.totalorder %s1354_s21, 0 }
  0x3d   : > { %v190_v10 = vadd.f32 %v963_v7, %v188_v6  ;;  %v191_v11 = vadd.f32 %v968_v9, %v189_v8  ;;  %v989_v20 = vld [vmem:[%s938_s7 + $0x50] sm:$0xff]  ;;  %v992_v21 = vld [vmem:[%s938_s7 + $0x58] sm:$0xff]  ;;  %v997_v24 = vld [vmem:[%s938_s7 + $0x60] sm:$0xff]  ;;  %v278_v47 = vadd.f32 %v976_v13, %v968_v9  ;;  %v294_v57 = vmin.f32 %v968_v9, %v976_v13  ;;  %p740_p6 = scmp.ne.s32.totalorder %s1306_s8, %s739_s19  ;;  %s812_s23 = smov [#allocation5]  }
  0x3e   : > { %v1000_v25 = vld [vmem:[%s938_s7 + $0x68] sm:$0xff]  ;;  %v1005_v28 = vld [vmem:[%s938_s7 + $0x70] sm:$0xff]  ;;  %v1008_v29 = vld [vmem:[%s938_s7 + $0x78] sm:$0xff]  ;;  %v303_v54 = vadd.f32 %v989_v20, %v981_v16  ;;  %v304_v55 = vadd.f32 %v992_v21, %v984_v17  ;;  %v319_v61 = vmin.f32 %v981_v16, %v989_v20  ;;  %v320_v62 = vmin.f32 %v984_v17, %v992_v21  ;;  %s743_s24 = sshll.u32 %s812_s23, 4  ;;  %s744_s24 = int_to_ptr.vmem [resolvable:$false] %s743_s24 }
  0x3f   : > { %v192_v14 = vadd.f32 %v973_v12, %v190_v10  ;;  %v193_v15 = vadd.f32 %v976_v13, %v191_v11  ;;  %v1038_v58 = vadd.f32 %v1005_v28, %v997_v24  ;;  %v1042_v59 = vadd.f32 %v1008_v29, %v1000_v25  ;;  %p741_p12 = pnand %p740_p6, %p1378_p11  ;;  %s745_s25 = scalar_lea.vmem %s744_s24, 512 }
  0x40   : > { %v345_v63 = vmin.f32 %v997_v24, %v1005_v28  ;;  %v346_v1 = vmin.f32 %v1000_v25, %v1008_v29  ;;  %p746_p4 = scmp.lt.s32.totalorder %s1306_s8, %s744_s24  ;;  %p747_p10 = scmp.lt.s32.totalorder %s745_s25, %s739_s19 }
  0x41   : > { %v194_v18 = vadd.f32 %v981_v16, %v192_v14  ;;  %v195_v19 = vadd.f32 %v984_v17, %v193_v15  ;;  %p742_p13 = pneg %p741_p12 }
  0x42   : > { %p748_p1 = por %p747_p10, %p746_p4 }
  0x43   : > { %v196_v22 = vadd.f32 %v989_v20, %v194_v18  ;;  %v197_v23 = vadd.f32 %v992_v21, %v195_v19 }
  0x44   : > { %p749_p3 = pnand %p748_p1, %p742_p13 }
  0x45   : > { %v198_v26 = vadd.f32 %v997_v24, %v196_v22  ;;  %v199_v27 = vadd.f32 %v1000_v25, %v197_v23 }
  0x47   : > { %v200_v30 = vadd.f32 %v1005_v28, %v198_v26  ;;  %v201_v31 = vadd.f32 %v1008_v29, %v199_v27 }
  0x49   : > { %v204_v32 = vrot.slane %v200_v30, 4  ;;  %v210_v33 = vrot.slane %v201_v31, 4  ;;  %v1016_v48 = vmul.f32 0.125, %v200_v30  ;;  %v1024_v52 = vmul.f32 0.125, %v201_v31 }
  0x4b   : > { %v205_v34 = vadd.f32 %v204_v32, %v200_v30  ;;  %v211_v35 = vadd.f32 %v210_v33, %v201_v31 }
  0x4d   : > { %v206_v36 = vrot.slane %v205_v34, 2  ;;  %v212_v37 = vrot.slane %v211_v35, 2 }
  0x4f   : > { %v207_v38 = vadd.f32 %v206_v36, %v205_v34  ;;  %v213_v39 = vadd.f32 %v212_v37, %v211_v35 }
  0x51   : > { %v208_v40 = vrot.slane %v207_v38, 1  ;;  %v214_v41 = vrot.slane %v213_v39, 1 }
  0x53   : > { %v209_v42 = vadd.f32 %v208_v40, %v207_v38  ;;  %v215_v43 = vadd.f32 %v214_v41, %v213_v39 }
  0x55   : > { %v216_v44 = vsub.f32 %v209_v42, %v200_v30  ;;  %v217_v45 = vsub.f32 %v215_v43, %v201_v31 }
  0x57   : > { %v1018_v49 = vmul.f32 0.125, %v216_v44  ;;  %v1026_v53 = vmul.f32 0.125, %v217_v45 }
  0x59   : > { %v1056_v10 = vmax.f32 %v1016_v48, %v1018_v49  ;;  %v1064_v15 = vmax.f32 %v1024_v52, %v1026_v53 }
  0x5b   : > { %v229_v36 = vsub.f32 %v1026_v53, %v1064_v15 }
  0xba   : > { %v1044_v60 = vpop.permute.xlu0 %250 }
  0xbb   : > { %v253_v11 = vsub.f32 %v188_v6, %v1044_v60  ;;  %v254_v14 = vsub.f32 %v189_v8, %v1044_v60  ;;  %vm255_vm0 = vcmp.le.f32.partialorder %v949_v2, %v1044_v60  ;;  %vm256_vm1 = vcmp.le.f32.partialorder %v955_v4, %v1044_v60 }
  0xbc   : > { %vm257_vm2 = vcmp.le.f32.partialorder %v952_v3, %v1044_v60  ;;  %vm258_vm3 = vcmp.le.f32.partialorder %v958_v5, %v1044_v60  ;;  %vm261_vm4 = vcmp.ge.f32.partialorder %v949_v2, %v1044_v60  ;;  %vm263_vm5 = vcmp.ge.f32.partialorder %v952_v3, %v1044_v60 }
  0xbd   : > { %v269_v6 = vmax.f32 %v253_v11, 0.0  ;;  %v270_v8 = vmax.f32 %v254_v14, 0.0  ;;  %vm259_vm6 = vmand %vm255_vm0, %vm257_vm2  ;;  %vm262_vm7 = vcmp.ge.f32.partialorder %v955_v4, %v1044_v60  ;;  %vm264_vm8 = vcmp.ge.f32.partialorder %v958_v5, %v1044_v60 }
  0xbe   : > { %v279_v18 = vsub.f32 %v277_v46, %v1044_v60  ;;  %v280_v19 = vsub.f32 %v278_v47, %v1044_v60  ;;  %vm260_vm9 = vmand %vm256_vm1, %vm258_vm3  ;;  %v273_v23 = vmin.f32 %v253_v11, 1.0  ;;  %v274_v2 = vmin.f32 %v254_v14, 1.0 }
  0xbf   : > { %v271_v22 = vsel %vm259_vm6, %v269_v6, %v267_v50  ;;  %vm281_vm10 = vcmp.le.f32.partialorder %v963_v7, %v1044_v60  ;;  %vm1084_vm11 = vmand %vm261_vm4, %vm263_vm5  ;;  %v272_v26 = vsel %vm260_vm9, %v270_v8, %v268_v51  ;;  %vm282_vm12 = vcmp.le.f32.partialorder %v968_v9, %v1044_v60 }
  0xc0   : > { %vm283_vm13 = vcmp.le.f32.partialorder %v973_v12, %v1044_v60  ;;  %vm284_vm14 = vcmp.le.f32.partialorder %v976_v13, %v1044_v60  ;;  %vm1094_vm15 = vmand %vm262_vm7, %vm264_vm8  ;;  %vm287_vm0 = vcmp.ge.f32.partialorder %v963_v7, %v1044_v60  ;;  %vm288_vm1 = vcmp.ge.f32.partialorder %v968_v9, %v1044_v60 }
  0xc1   : > { %vm289_vm2 = vcmp.ge.f32.partialorder %v973_v12, %v1044_v60  ;;  %vm290_vm3 = vcmp.ge.f32.partialorder %v976_v13, %v1044_v60  ;;  %vm285_vm4 = vmand %vm281_vm10, %vm283_vm13  ;;  %v295_v5 = vmax.f32 %v279_v18, 0.0  ;;  %v296_v27 = vmax.f32 %v280_v19, 0.0 }
  0xc2   : > { %v299_v30 = vmin.f32 %v279_v18, 1.0  ;;  %v300_v31 = vmin.f32 %v280_v19, 1.0  ;;  %vm286_vm5 = vmand %vm282_vm12, %vm284_vm14  ;;  %v305_v32 = vsub.f32 %v303_v54, %v1044_v60  ;;  %v306_v33 = vsub.f32 %v304_v55, %v1044_v60 }
  0xc3   : > { %vm307_vm6 = vcmp.le.f32.partialorder %v981_v16, %v1044_v60  ;;  %vm308_vm7 = vcmp.le.f32.partialorder %v984_v17, %v1044_v60  ;;  %vm291_vm8 = vmand %vm287_vm0, %vm289_vm2  ;;  %v297_v7 = vsel %vm285_vm4, %v295_v5, %v293_v56  ;;  %v298_v12 = vsel %vm286_vm5, %v296_v27, %v294_v57 }
  0xc4   : > { %vm309_vm9 = vcmp.le.f32.partialorder %v989_v20, %v1044_v60  ;;  %vm310_vm10 = vcmp.le.f32.partialorder %v992_v21, %v1044_v60  ;;  %v1118_v34 = vsel %vm1084_vm11, %v273_v23, %v271_v22  ;;  %v1122_v35 = vsel %vm1094_vm15, %v274_v2, %v272_v26  ;;  %vm292_vm12 = vmand %vm288_vm1, %vm290_vm3 }
  0xc5   : > { %vm313_vm13 = vcmp.ge.f32.partialorder %v981_v16, %v1044_v60  ;;  %vm314_vm14 = vcmp.ge.f32.partialorder %v984_v17, %v1044_v60  ;;  %vm1134_vm0 = vmand %vm307_vm6, %vm309_vm9  ;;  %vm315_vm11 = vcmp.ge.f32.partialorder %v989_v20, %v1044_v60  ;;  %vm316_vm15 = vcmp.ge.f32.partialorder %v992_v21, %v1044_v60 }
  0xc6   : > { %v321_v13 = vmax.f32 %v305_v32, 0.0  ;;  %v322_v37 = vmax.f32 %v306_v33, 0.0  ;;  %v301_v9 = vsel %vm291_vm8, %v299_v30, %v297_v7  ;;  %v302_v38 = vsel %vm292_vm12, %v300_v31, %v298_v12  ;;  %vm312_vm1 = vmand %vm308_vm7, %vm310_vm10 }
  0xc7   : > { %v331_v39 = vsub.f32 %v1038_v58, %v1044_v60  ;;  %v332_v40 = vsub.f32 %v1042_v59, %v1044_v60  ;;  %vm1149_vm2 = vmand %vm313_vm13, %vm315_vm11  ;;  %v325_v42 = vmin.f32 %v305_v32, 1.0  ;;  %v326_v43 = vmin.f32 %v306_v33, 1.0 }
  0xc8   : > { %vm333_vm3 = vcmp.le.f32.partialorder %v997_v24, %v1044_v60  ;;  %vm334_vm4 = vcmp.le.f32.partialorder %v1000_v25, %v1044_v60  ;;  %vm1160_vm5 = vmand %vm314_vm14, %vm316_vm15  ;;  %v323_v45 = vsel %vm1134_vm0, %v321_v13, %v319_v61  ;;  %v324_v46 = vsel %vm312_vm1, %v322_v37, %v320_v62 }
  0xc9   : > { %vm335_vm6 = vcmp.le.f32.partialorder %v1005_v28, %v1044_v60  ;;  %vm336_vm7 = vcmp.le.f32.partialorder %v1008_v29, %v1044_v60  ;;  %vm339_vm9 = vcmp.ge.f32.partialorder %v997_v24, %v1044_v60  ;;  %vm340_vm10 = vcmp.ge.f32.partialorder %v1000_v25, %v1044_v60 }
  0xca   : > { %vm1176_vm8 = vmand %vm333_vm3, %vm335_vm6  ;;  %vm341_vm12 = vcmp.ge.f32.partialorder %v1005_v28, %v1044_v60  ;;  %vm342_vm13 = vcmp.ge.f32.partialorder %v1008_v29, %v1044_v60  ;;  %v347_v16 = vmax.f32 %v331_v39, 0.0  ;;  %v348_v17 = vmax.f32 %v332_v40, 0.0 }
  0xcb   : > { %vm338_vm14 = vmand %vm334_vm4, %vm336_vm7  ;;  %v351_v20 = vmin.f32 %v331_v39, 1.0  ;;  %v352_v21 = vmin.f32 %v332_v40, 1.0  ;;  %v327_v50 = vsel %vm1149_vm2, %v325_v42, %v323_v45  ;;  %v328_v51 = vsel %vm1160_vm5, %v326_v43, %v324_v46 }
  0xcc   : > { %vm343_vm0 = vmand %vm339_vm9, %vm341_vm12  ;;  %v355_v54 = vadd.f32 %v301_v9, %v1118_v34  ;;  %v356_v55 = vadd.f32 %v302_v38, %v1122_v35  ;;  %v349_v56 = vsel %vm1176_vm8, %v347_v16, %v345_v63  ;;  %v350_v57 = vsel %vm338_vm14, %v348_v17, %v346_v1 }
  0xcd   : > { %vm344_vm11 = vmand %vm340_vm10, %vm342_vm13  ;;  %vm359_vm15 = vcmp.le.f32.partialorder %v1118_v34, %v1044_v60  ;;  %vm361_vm1 = vcmp.le.f32.partialorder %v301_v9, %v1044_v60  ;;  %v353_v58 = vsel %vm343_vm0, %v351_v20, %v349_v56  ;;  %vm360_vm2 = vcmp.le.f32.partialorder %v1122_v35, %v1044_v60 }
  0xce   : > { %v354_v59 = vsel %vm344_vm11, %v352_v21, %v350_v57  ;;  %v357_v61 = vsub.f32 %v355_v54, %v1044_v60  ;;  %v358_v62 = vsub.f32 %v356_v55, %v1044_v60  ;;  %vm362_vm3 = vcmp.le.f32.partialorder %v302_v38, %v1044_v60  ;;  %vm363_vm7 = vmand %vm359_vm15, %vm361_vm1 }
  0xcf   : > { %vm365_vm4 = vcmp.ge.f32.partialorder %v1118_v34, %v1044_v60  ;;  %vm366_vm5 = vcmp.ge.f32.partialorder %v1122_v35, %v1044_v60  ;;  %vm367_vm6 = vcmp.ge.f32.partialorder %v301_v9, %v1044_v60  ;;  %v371_v24 = vmin.f32 %v1118_v34, %v301_v9  ;;  %vm364_vm9 = vmand %vm360_vm2, %vm362_vm3 }
  0xd0   : > { %v373_v25 = vmax.f32 %v357_v61, 0.0  ;;  %v374_v28 = vmax.f32 %v358_v62, 0.0  ;;  %vm368_vm8 = vcmp.ge.f32.partialorder %v302_v38, %v1044_v60  ;;  %v372_v29 = vmin.f32 %v1122_v35, %v302_v38  ;;  %vm1222_vm12 = vmand %vm365_vm4, %vm367_vm6 }
  0xd1   : > { %v381_v63 = vadd.f32 %v353_v58, %v327_v50  ;;  %v382_v1 = vadd.f32 %v354_v59, %v328_v51  ;;  %v377_v14 = vmin.f32 %v357_v61, 1.0  ;;  %v378_v6 = vmin.f32 %v358_v62, 1.0  ;;  %vm1232_vm14 = vmand %vm366_vm5, %vm368_vm8 }
  0xd2   : > { %v375_v11 = vsel %vm363_vm7, %v373_v25, %v371_v24  ;;  %vm385_vm10 = vcmp.le.f32.partialorder %v327_v50, %v1044_v60  ;;  %v376_v18 = vsel %vm364_vm9, %v374_v28, %v372_v29  ;;  %vm386_vm13 = vcmp.le.f32.partialorder %v328_v51, %v1044_v60 }
  0xd3   : > { %v383_v19 = vsub.f32 %v381_v63, %v1044_v60  ;;  %v384_v22 = vsub.f32 %v382_v1, %v1044_v60  ;;  %vm387_vm0 = vcmp.le.f32.partialorder %v353_v58, %v1044_v60  ;;  %vm388_vm11 = vcmp.le.f32.partialorder %v354_v59, %v1044_v60 }
  0xd4   : > { %vm391_vm15 = vcmp.ge.f32.partialorder %v327_v50, %v1044_v60  ;;  %vm392_vm1 = vcmp.ge.f32.partialorder %v328_v51, %v1044_v60  ;;  %vm1240_vm2 = vmand %vm385_vm10, %vm387_vm0  ;;  %vm393_vm3 = vcmp.ge.f32.partialorder %v353_v58, %v1044_v60  ;;  %vm394_vm4 = vcmp.ge.f32.partialorder %v354_v59, %v1044_v60 }
  0xd5   : > { %v397_v3 = vmin.f32 %v327_v50, %v353_v58  ;;  %v398_v26 = vmin.f32 %v328_v51, %v354_v59  ;;  %vm390_vm5 = vmand %vm386_vm13, %vm388_vm11  ;;  %v399_v4 = vmax.f32 %v383_v19, 0.0  ;;  %v400_v5 = vmax.f32 %v384_v22, 0.0 }
  0xd6   : > { %v403_v27 = vmin.f32 %v383_v19, 1.0  ;;  %v404_v30 = vmin.f32 %v384_v22, 1.0  ;;  %v222_v31 = vsub.f32 %v1016_v48, %v1056_v10  ;;  %v379_v32 = vsel %vm1222_vm12, %v377_v14, %v375_v11  ;;  %vm395_vm6 = vmand %vm391_vm15, %vm393_vm3 }
  0xd7   : > { %v380_v33 = vsel %vm1232_vm14, %v378_v6, %v376_v18  ;;  %v433_v7 = vlaneseq  ;;  %v223_v12 = vsub.f32 %v1024_v52, %v1064_v15  ;;  %vm396_vm7 = vmand %vm392_vm1, %vm394_vm4  ;;  %v401_v34 = vsel %vm1240_vm2, %v399_v4, %v397_v3 }
  0xd8   : > { %v402_v48 = vsel %vm390_vm5, %v400_v5, %v398_v26  ;;  %v228_v35 = vsub.f32 %v1018_v49, %v1056_v10  ;;  %v405_v13 = vsel %vm395_vm6, %v403_v27, %v401_v34  ;;  %vm411_vm8 = vcmp.le.f32.partialorder %v379_v32, %v1044_v60 }
  0xd9   : > { %v406_v37 = vsel %vm396_vm7, %v404_v30, %v402_v48  ;;  %v407_v9 = vadd.f32 %v405_v13, %v379_v32  ;;  %vm413_vm9 = vcmp.le.f32.partialorder %v405_v13, %v1044_v60  ;;  %v224_v52 = vmul.f32 1.442695, %v222_v31 }
  0xda   : > { %v408_v38 = vadd.f32 %v406_v37, %v380_v33  ;;  %vm412_vm10 = vcmp.le.f32.partialorder %v380_v33, %v1044_v60  ;;  %vm414_vm12 = vcmp.le.f32.partialorder %v406_v37, %v1044_v60  ;;  %v1268_v39 = vshrl.u32 %v433_v7, 7  ;;  %vm1274_vm0 = vmand %vm411_vm8, %vm413_vm9 }
  0xdb   : > { %v409_v49 = vsub.f32 %v407_v9, %v1044_v60  ;;  %vm417_vm13 = vcmp.ge.f32.partialorder %v379_v32, %v1044_v60  ;;  %vm419_vm14 = vcmp.ge.f32.partialorder %v405_v13, %v1044_v60  ;;  %vm418_vm11 = vcmp.ge.f32.partialorder %v380_v33, %v1044_v60  ;;  %vm416_vm1 = vmand %vm412_vm10, %vm414_vm12 }
  0xdc   : > { %v410_v10 = vsub.f32 %v408_v38, %v1044_v60  ;;  %vm420_vm15 = vcmp.ge.f32.partialorder %v406_v37, %v1044_v60  ;;  %v423_v15 = vmin.f32 %v379_v32, %v405_v13  ;;  %v424_v40 = vmin.f32 %v380_v33, %v406_v37  ;;  %vm421_vm2 = vmand %vm417_vm13, %vm419_vm14 }
  0xdd   : > { %v425_v41 = vmax.f32 %v409_v49, 0.0  ;;  %v429_v43 = vmin.f32 %v409_v49, 1.0  ;;  %v226_v45 = vmul.f32 1.442695, %v223_v12  ;;  %vm435_vm3 = vcmp.ge.s32.totalorder %v1268_v39, 1  ;;  %vm422_vm4 = vmand %vm418_vm11, %vm420_vm15 }
  0xde   : > { %v426_v42 = vmax.f32 %v410_v10, 0.0  ;;  %v430_v44 = vmin.f32 %v410_v10, 1.0  ;;  %v230_v46 = vmul.f32 1.442695, %v228_v35  ;;  %v232_v17 = vmul.f32 1.442695, %v229_v36 }
  0xdf   : > { %v427_v47 = vsel %vm1274_vm0, %v425_v41, %v423_v15  ;;  %689 = vpow2.f32 %v224_v52  ;;  %v486_v15 = vsub.s32 0, %v1268_v39  ;;  %vm508_vm9 = vcmp.eq.s32.totalorder %v1268_v39, 0 }
  0xe0   : > { %v428_v16 = vsel %vm416_vm1, %v426_v42, %v424_v40  ;;  %v1283_v20 = vsel %vm421_vm2, %v429_v43, %v427_v47  ;;  %691 = vpow2.f32 %v226_v45 }
  0xe1   : > { %v1285_v60 = vsel %vm422_vm4, %v430_v44, %v428_v16  ;;  %v438_v21 = vsel %vm435_vm3, %v1283_v20, -1e+30  ;;  %693 = vpow2.f32 %v230_v46 }
  0xe2   : > { %v439_v50 = vsel %vm435_vm3, %v1285_v60, -1e+30  ;;  %v440_v51 = vrot.slane %v438_v21, 4  ;;  %695 = vpow2.f32 %v232_v17 }
  0xe3   : > { %v446_v54 = vrot.slane %v439_v50, 4 }
  0xe4   : > { %v441_v55 = vmax.f32 %v438_v21, %v440_v51 }
  0xe5   : > { %v447_v56 = vmax.f32 %v439_v50, %v446_v54 }
  0xe6   : > { %v442_v57 = vrot.slane %v441_v55, 2 }
  0xe7   : > { %v448_v58 = vrot.slane %v447_v56, 2 }
  0xe8   : > { %v443_v59 = vmax.f32 %v441_v55, %v442_v57 }
  0xe9   : > { %v449_v61 = vmax.f32 %v447_v56, %v448_v58  ;;  %v690_v25 = vpop.eup %689 }
  0xea   : > { %v444_v62 = vrot.slane %v443_v59, 1  ;;  %v692_v28 = vpop.eup %691 }
  0xeb   : > { %v450_v24 = vrot.slane %v449_v61, 1  ;;  %v694_v1 = vpop.eup %693 }
  0xec   : > { %v445_v29 = vmax.f32 %v443_v59, %v444_v62  ;;  %v696_v11 = vpop.eup %695  ;;  %v234_v8 = vadd.f32 %v694_v1, %v690_v25 }
  0xed   : > { %v451_v63 = vmax.f32 %v449_v61, %v450_v24  ;;  %v235_v22 = vadd.f32 %v696_v11, %v692_v28 }
  0xee   : > { %v452_v14 = vsub.f32 %v438_v21, %v445_v29 }
  0xef   : > { %v453_v6 = vsub.f32 %v439_v50, %v451_v63 }
  0xf0   : > { %v454_v18 = vmul.f32 1.442695, %v452_v14 }
  0xf1   : > { %v456_v19 = vmul.f32 1.442695, %v453_v6 }
  0xf2   : > { %697 = vpow2.f32 %v454_v18 }
  0xf3   : > { %699 = vpow2.f32 %v456_v19 }
  0xf4   : > { %701 = vrcp.f32 %v234_v8 }
  0xf5   : > { %703 = vrcp.f32 %v235_v22 }
  0xfc   : > { %v698_v23 = vpop.eup %697 }
  0xfd   : > { %v700_v2 = vpop.eup %699  ;;  %v458_v3 = vrot.slane %v698_v23, 4 }
  0xfe   : > { %v702_v26 = vpop.eup %701  ;;  %v464_v4 = vrot.slane %v700_v2, 4 }
  0xff   : > { %v704_v5 = vpop.eup %703  ;;  %v459_v27 = vadd.f32 %v698_v23, %v458_v3  ;;  %v238_v31 = vmul.f32 %v702_v26, %v234_v8 }
 0x100   : > { %v465_v30 = vadd.f32 %v700_v2, %v464_v4  ;;  %v239_v33 = vmul.f32 %v704_v5, %v235_v22 }
 0x101   : > { %v460_v32 = vrot.slane %v459_v27, 2  ;;  %v240_v48 = vsub.f32 2.0, %v238_v31 }
 0x102   : > { %v466_v7 = vrot.slane %v465_v30, 2  ;;  %v241_v36 = vsub.f32 2.0, %v239_v33 }
 0x103   : > { %v461_v12 = vadd.f32 %v460_v32, %v459_v27  ;;  %v242_v38 = vmul.f32 %v702_v26, %v240_v48 }
 0x104   : > { %v467_v34 = vadd.f32 %v466_v7, %v465_v30  ;;  %v243_v52 = vmul.f32 %v704_v5, %v241_v36 }
 0x105   : > { %v462_v35 = vrot.slane %v461_v12, 1  ;;  %v244_v49 = vmul.f32 %v690_v25, %v242_v38  ;;  %v246_v41 = vmul.f32 %v694_v1, %v242_v38 }
 0x106   : > { %v468_v13 = vrot.slane %v467_v34, 1  ;;  %v245_v10 = vmul.f32 %v692_v28, %v243_v52  ;;  %v247_v44 = vmul.f32 %v696_v11, %v243_v52 }
 0x107   : > { %v463_v37 = vadd.f32 %v462_v35, %v461_v12  ;;  %vm480_vm5 = vcmp.ge.f32.partialorder %v244_v49, 0.5  ;;  %v487_v51 = vrot.slane %v246_v41, %v486_v15 }
 0x108   : > { %v469_v9 = vadd.f32 %v468_v13, %v467_v34  ;;  %vm481_vm6 = vcmp.ge.f32.partialorder %v245_v10, 0.5  ;;  %v494_v43 = vsel %vm480_vm5, 1, %v811_v0  ;;  %v482_v50 = vsel %vm480_vm5, %v244_v49, 0.0 }
 0x109   : > { %705 = vrcp.f32 %v463_v37  ;;  %v495_v46 = vsel %vm481_vm6, 1, %v811_v0  ;;  %v499_v17 = vrot.slane %v494_v43, %v486_v15  ;;  %v483_v56 = vsel %vm481_vm6, %v245_v10, 0.0 }
 0x10a   : > { %707 = vrcp.f32 %v469_v9  ;;  %v503_v54 = vrot.slane %v495_v46, %v486_v15  ;;  %v491_v57 = vrot.slane %v247_v44, %v486_v15  ;;  %v514_v61 = vrot.slane %v482_v50, %v486_v15 }
 0x10b   : > { %vm504_vm7 = vcmp.eq.s32.totalorder %v499_v17, 1  ;;  %v518_v0 = vrot.slane %v483_v56, %v486_v15 }
 0x10c   : > { %vm505_vm8 = vcmp.eq.s32.totalorder %v503_v54, 1 }
 0x113   : > { %v706_v53 = vpop.eup %705 }
 0x114   : > { %v708_v40 = vpop.eup %707  ;;  %v472_v42 = vmul.f32 %v706_v53, %v463_v37 }
 0x115   : > { %v473_v45 = vmul.f32 %v708_v40, %v469_v9 }
 0x116   : > { %v474_v47 = vsub.f32 2.0, %v472_v42 }
 0x117   : > { %v475_v16 = vsub.f32 2.0, %v473_v45 }
 0x118   : > { %v476_v21 = vmul.f32 %v706_v53, %v474_v47 }
 0x119   : > { %v477_v55 = vmul.f32 %v708_v40, %v475_v16 }
 0x11a   : > { %v478_v58 = vmul.f32 %v698_v23, %v476_v21 }
 0x11b   : > { %v479_v59 = vmul.f32 %v700_v2, %v477_v55 }
 0x11c   : > { %v492_v62 = vmul.f32 %v487_v51, %v478_v58 }
 0x11d   : > { %v493_v24 = vmul.f32 %v491_v57, %v479_v59 }
 0x11e   : > { %v506_v25 = vsel %vm504_vm7, %v492_v62, %v1283_v20 }
 0x11f   : > { %v507_v28 = vsel %vm505_vm8, %v493_v24, %v1285_v60  ;;  %v519_v29 = vsel %vm508_vm9, %v514_v61, %v506_v25 }
 0x120   : > { %v520_v39 = vsel %vm508_vm9, %v518_v0, %v507_v28  ;;  %521 = vst [vmem:[%s161_s4] sm:$0xff] %v519_v29 }
 0x121   : > { %522 = vst [vmem:[%s161_s4 + $0x8] sm:$0xff] %v520_v39 }
 0x122   : > { %752 = shalt.err (!%p749_p3)
}
 0x123   : > { %s753_s26 = scalar_lea.hbm %s1304_s17, 256  ;;  %s757_s5 = scalar_lea.hbm %s1350_s2, 512 }
 0x124   : > { %p754_p5 = scmp.ne.s32.totalorder %s1304_s17, %s753_s26  ;;  %p758_p9 = scmp.lt.u32.totalorder %s1304_s17, %s1350_s2 }
 0x125   : > { %p759_p0 = scmp.lt.u32.totalorder %s757_s5, %s753_s26  ;;  %p761_p6 = scmp.lt.u32.totalorder %s753_s26, %s1304_s17 }
 0x126   : > { %p755_p7 = pnand %p754_p5, %p1378_p11 }
 0x127   : > { %p760_p2 = por %p759_p0, %p758_p9 }
 0x128   : > { %p756_p8 = pneg %p755_p7 }
 0x129   : > { %p762_p12 = por %p761_p6, %p760_p2 }
 0x12b   : > { %p763_p13 = pnand %p762_p12, %p756_p8 }
 0x12d   : > { %766 = shalt.err (!%p763_p13)
}
 0x12e   : > { %640 = dma.vmem_to_hbm [thread:$0]  (%p1378_p11), %s1306_s8, 256, %s1304_s17, %s524_s13  }
 0x12f PF: > { %s550_s28 = sand.u32 1, %s793_s9   ;;  %p1379_p4 = scmp.ne.s32.totalorder %s1355_s22, 0 }
 0x130   : > { %p1380_p10 = scmp.ge.s32.totalorder %s805_s12, 2  ;;  %s551_s30 = scalar_lea.sflag [#allocation4], %s550_s28 }
 0x132   : > { %p647_p1 = pnand %p1380_p10, %p1379_p4 }
 0x134   : > { %788 = dma.done.wait (!%p647_p1), %s551_s30, 256  }
 0x135   : > { %790 = vsyncadd (!%p647_p1), %s551_s30, 4294967040  ;;  %p15_p3 = scmp.ge.s32.totalorder %s853_s15, 4   ;;  %s1381_s9 = smov %s797_s10 }
 0x136   : > { %s1382_s10 = smov %s801_s11  ;;  %s1383_s11 = smov %s865_s18 }
 0x137   : > { %s1384_s12 = smov %s853_s15  ;;  %17 = sbr.rel (!%p15_p3) target bundleno = 5 (0x5), region = 80 }
 0x13e   :  { %556 = vsyncpa [#allocation3], 1 }
 0x13f   :  { %558 = vsyncpa [#allocation3 + $0x1], 1 }
 0x140   :  { %559 = vsyncpa [#allocation4], 1 }
 0x141   :  { %561 = vsyncpa [#allocation4 + $0x1], 1 }

</bundles_post_ra>
